<compile_context>
chip_gen: v7x
topology: tpu7x:2x2x1
jax: 0.10.0
libtpu: 0.0.40
codegen_flags: <defaults>
</compile_context>

<pallas_src>
import functools
from types import SimpleNamespace

import numpy as np
import jax
import jax.numpy as jnp
from jax.experimental import pallas as pl
from jax.experimental.pallas import tpu as pltpu


LANE = 128


def _round_up(x, m):
    return ((x + m - 1) // m) * m


# ------------------------------ Pallas kernel ------------------------------ #

def _sage_kernel(a_ref, h_ref, x_ref, *rest, activation, apply_wl):
    """Fused SAGEConv:  out = act( (A_mean @ H) [@ W_l] + X @ W_r_aug ).

    Grid = (row_tiles, k_tiles).  k is the reduction over source nodes.
    The bias is folded into W_r_aug via a ones-column of X.
    """
    if apply_wl:
        wl_ref, wr_ref, o_ref, acc_ref = rest
    else:
        wr_ref, o_ref, acc_ref = rest

    k = pl.program_id(1)

    @pl.when(k == 0)
    def _():
        acc_ref[...] = jnp.zeros_like(acc_ref)

    # bf16 operands, f32 accumulation on the MXU.
    acc_ref[...] += jnp.dot(a_ref[...], h_ref[...],
                            preferred_element_type=jnp.float32)

    @pl.when(k == pl.num_programs(1) - 1)
    def _():
        if apply_wl:
            neigh = jnp.dot(acc_ref[...].astype(jnp.bfloat16), wl_ref[...],
                            preferred_element_type=jnp.float32)
        else:
            neigh = acc_ref[...]
        root = jnp.dot(x_ref[...], wr_ref[...],
                       preferred_element_type=jnp.float32)
        out = neigh + root            # bias already folded into the root path
        if activation == 'relu':
            out = jnp.maximum(out, 0.0)
        o_ref[...] = out.astype(o_ref.dtype)


# ------------------------------ Pallas wrapper ------------------------------ #

def sage_conv_forward(a_mean, x, w_l, b_l, w_r, activation, *, block_n=256):
    """out = act( (A_mean @ x) @ w_l + b_l + x @ w_r ),  fused in one kernel."""
    n, c_in = x.shape
    c_out = w_l.shape[1]
    apply_wl = c_out >= c_in          # pick association by min(Cin, Cout)

    # Tile / padding geometry (lane-dense channels, (8,128)-friendly blocks).
    t = min(block_n, _round_up(n, LANE))
    n_pad = _round_up(n, t)
    c_in_p = _round_up(c_in + 1, LANE)            # +1 column carries the bias
    c_out_p = _round_up(c_out, LANE)
    ch_p = c_in_p if apply_wl else c_out_p        # channels of the aggregated H

    # --- build padded bf16 operands (zero padding keeps the math exact) ---
    a_p = jnp.zeros((n_pad, n_pad), jnp.bfloat16)
    a_p = a_p.at[:n, :n].set(a_mean.astype(jnp.bfloat16))

    x_p = jnp.zeros((n_pad, c_in_p), jnp.float32)
    x_p = x_p.at[:n, :c_in].set(x.astype(jnp.float32))
    x_p = x_p.at[:n, c_in].set(1.0)               # ones column for the bias
    x_p = x_p.astype(jnp.bfloat16)

    w_r_p = jnp.zeros((c_in_p, c_out_p), jnp.float32)
    w_r_p = w_r_p.at[:c_in, :c_out].set(w_r)
    w_r_p = w_r_p.at[c_in, :c_out].set(b_l)       # bias folded into root matmul
    w_r_p = w_r_p.astype(jnp.bfloat16)

    if apply_wl:
        h_p = x_p                                 # aggregate raw features
        w_l_p = jnp.zeros((c_in_p, c_out_p), jnp.float32)
        w_l_p = w_l_p.at[:c_in, :c_out].set(w_l).astype(jnp.bfloat16)
    else:
        # Cout < Cin: pre-transform (tiny (N,Cin)@(Cin,Cout)), aggregate that.
        h = x.astype(jnp.float32) @ w_l
        h_p = jnp.zeros((n_pad, c_out_p), jnp.bfloat16)
        h_p = h_p.at[:n, :c_out].set(h.astype(jnp.bfloat16))

    grid = (n_pad // t, n_pad // t)

    in_specs = [
        pl.BlockSpec((t, t), lambda i, k: (i, k)),          # A_mean tile
        pl.BlockSpec((t, ch_p), lambda i, k: (k, 0)),       # source features H
        pl.BlockSpec((t, c_in_p), lambda i, k: (i, 0)),     # root features X
    ]
    operands = [a_p, h_p, x_p]
    if apply_wl:
        in_specs.append(pl.BlockSpec((c_in_p, c_out_p), lambda i, k: (0, 0)))
        operands.append(w_l_p)
    in_specs.append(pl.BlockSpec((c_in_p, c_out_p), lambda i, k: (0, 0)))
    operands.append(w_r_p)

    # VMEM budget estimate (double-buffered blocks + weights + accumulator),
    # clamped to stay inside v7x's 64 MiB physical VMEM.
    est = (2 * (t * t * 2 + t * ch_p * 2 + t * c_in_p * 2 + t * c_out_p * 4)
           + 4 * (c_in_p * c_out_p * 2)
           + t * ch_p * 4
           + (4 << 20))
    vmem_limit = int(min(max(est, 16 << 20), 64 << 20))

    kernel = functools.partial(_sage_kernel,
                               activation=activation, apply_wl=apply_wl)

    out_p = pl.pallas_call(
        kernel,
        out_shape=jax.ShapeDtypeStruct((n_pad, c_out_p), jnp.float32),
        grid_spec=pltpu.PrefetchScalarGridSpec(
            num_scalar_prefetch=0,
            grid=grid,
            in_specs=in_specs,
            out_specs=pl.BlockSpec((t, c_out_p), lambda i, k: (i, 0)),
            scratch_shapes=[pltpu.VMEM((t, ch_p), jnp.float32)],
        ),
        compiler_params=pltpu.CompilerParams(
            dimension_semantics=("parallel", "arbitrary"),
            vmem_limit_bytes=vmem_limit,
        ),
    )(*operands)

    return out_p[:n, :c_out]


# ------------------------- graph glue (plain JAX) --------------------------- #

def build_mean_adjacency(edge_index, num_nodes):
    """Dense mean-aggregation matrix A with A[dst, src] = count(src->dst)/deg_in(dst),
    matching PyG SAGEConv's 'mean' aggregation (zero rows for isolated nodes)."""
    src, dst = edge_index[0], edge_index[1]
    ones = jnp.ones(src.shape, jnp.float32)
    deg = jnp.zeros((num_nodes,), jnp.float32).at[dst].add(ones)
    a = jnp.zeros((num_nodes, num_nodes), jnp.float32).at[dst, src].add(ones)
    inv = jnp.where(deg > 0, 1.0 / deg, 0.0)
    return a * inv[:, None]


# --------------------------------- module ----------------------------------- #

class SAGEConvModulePallas:
    def __init__(self, num_channels_in, num_channels_out, activation,
                 batch_norm=False, *, key):
        self.activation = activation
        self.batch_norm = batch_norm
        # TODO(synk): BatchNorm1d not implemented in the kernel; this config
        # uses batch_norm=False, matching the reference module default.
        assert not batch_norm

        k_wl, k_bl, k_wr = jax.random.split(key, 3)
        bound = float(1.0 / np.sqrt(num_channels_in))
        self.w_l = jax.random.uniform(
            k_wl, (num_channels_in, num_channels_out), jnp.float32, -bound, bound)
        self.b_l = jax.random.uniform(
            k_bl, (num_channels_out,), jnp.float32, -bound, bound)
        self.w_r = jax.random.uniform(
            k_wr, (num_channels_in, num_channels_out), jnp.float32, -bound, bound)

    def __call__(self, data, x):
        # data.edge_attr is extracted by the reference module but unused by
        # SAGEConv (edge weights are ignored) — same here.
        a_mean = build_mean_adjacency(data.edge_index, x.shape[0])
        return sage_conv_forward(a_mean, x.astype(jnp.float32),
                                 self.w_l, self.b_l, self.w_r, self.activation)

    # pure-JAX f32 reference for sanity checking
    def reference(self, data, x):
        xf = x.astype(jnp.float32)
        a_mean = build_mean_adjacency(data.edge_index, xf.shape[0])
        out = (a_mean @ xf) @ self.w_l + self.b_l + xf @ self.w_r
        if self.activation == 'relu':
            out = jnp.maximum(out, 0.0)
        return out


# ---------------------------------- main ------------------------------------ #

if __name__ == "__main__":
    key = jax.random.PRNGKey(0)
    k_x, k_src, k_dst, k_w, k_m1, k_m2 = jax.random.split(key, 6)

    # small synthetic graph: 16 nodes, 4 input channels, 40 directed edges
    N, C_IN, C_OUT, E = 16, 4, 32, 40
    x = jax.random.normal(k_x, (N, C_IN), jnp.float32)
    src = jax.random.randint(k_src, (E,), 0, N, jnp.int32)
    dst = jax.random.randint(k_dst, (E,), 0, N, jnp.int32)
    edge_index = jnp.stack([src, dst], axis=0)               # (2, E)
    edge_attr = jax.random.uniform(k_w, (E,), jnp.float32, 0.5, 1.5)  # unused by SAGEConv

    data = SimpleNamespace(x=x, edge_index=edge_index, edge_attr=edge_attr)

    # branch 1: Cout >= Cin  (aggregate raw X, apply W_l inside the kernel)
    model = SAGEConvModulePallas(C_IN, C_OUT, 'relu', batch_norm=False, key=k_m1)
    out = model(data, x)
    out = jax.block_until_ready(out)
    ref = model.reference(data, x)
    assert out.shape == (N, C_OUT)
    assert np.allclose(np.asarray(out), np.asarray(ref), atol=5e-2, rtol=5e-2), \
        "Pallas output mismatch vs pure-JAX reference (Cout >= Cin branch)"

    # branch 2: Cout < Cin  (pre-transform X @ W_l, aggregate transformed feats)
    model2 = SAGEConvModulePallas(C_IN, 2, 'None', batch_norm=False, key=k_m2)
    out2 = jax.block_until_ready(model2(data, x))
    ref2 = model2.reference(data, x)
    assert out2.shape == (N, 2)
    assert np.allclose(np.asarray(out2), np.asarray(ref2), atol=5e-2, rtol=5e-2), \
        "Pallas output mismatch vs pure-JAX reference (Cout < Cin branch)"

    print("KERNEL_OK")
</pallas_src>

<mosaic_0001>
module attributes {stable_mosaic.version = 11 : i64} {
  func.func @_sage_kernel(%arg0: i32, %arg1: i32, %arg2: memref<128x128xbf16, #tpu.memory_space<vmem>>, %arg3: memref<128x128xbf16, #tpu.memory_space<vmem>>, %arg4: memref<128x128xbf16, #tpu.memory_space<vmem>>, %arg5: memref<128x128xbf16, #tpu.memory_space<vmem>>, %arg6: memref<128x128xbf16, #tpu.memory_space<vmem>>, %arg7: memref<128x128xf32, #tpu.memory_space<vmem>>, %arg8: memref<128x128xf32, #tpu.memory_space<vmem>>) attributes {dimension_semantics = [#tpu.dimension_semantics<parallel>, #tpu.dimension_semantics<arbitrary>], iteration_bounds = array<i64: 1, 1>, scalar_prefetch = 0 : i64, scratch_operands = 1 : i64, tpu.core_type = #tpu.core_type<tc>, window_params = [{transform_indices = @transform_0, window_bounds = array<i64: 128, 128>}, {transform_indices = @transform_1, window_bounds = array<i64: 128, 128>}, {transform_indices = @transform_2, window_bounds = array<i64: 128, 128>}, {pipeline_mode = #tpu.pipeline_mode<synchronous>, transform_indices = @transform_3, window_bounds = array<i64: 128, 128>}, {pipeline_mode = #tpu.pipeline_mode<synchronous>, transform_indices = @transform_4, window_bounds = array<i64: 128, 128>}, {transform_indices = @transform_5, window_bounds = array<i64: 128, 128>}]} {
    %c0_i32 = arith.constant 0 : i32
    %0 = arith.cmpi eq, %arg1, %c0_i32 : i32
    %1 = arith.extui %0 : i1 to i32
    %c0_i32_0 = arith.constant 0 : i32
    %2 = arith.cmpi ne, %1, %c0_i32_0 : i32
    scf.if %2 {
      %cst_10 = arith.constant 0.000000e+00 : f32
      %12 = vector.broadcast %cst_10 : f32 to vector<128x128xf32>
      %c0_11 = arith.constant 0 : index
      %c0_12 = arith.constant 0 : index
      %13 = vector.load %arg8[%c0_11, %c0_12] : memref<128x128xf32, #tpu.memory_space<vmem>>, vector<128x128xf32>
      tpu.vector_store %arg8[%c0_11, %c0_12], %12 {strides = array<i32>} : memref<128x128xf32, #tpu.memory_space<vmem>>, vector<128x128xf32>,
    } else {
    }
    %c0 = arith.constant 0 : index
    %c0_1 = arith.constant 0 : index
    %3 = vector.load %arg8[%c0, %c0_1] : memref<128x128xf32, #tpu.memory_space<vmem>>, vector<128x128xf32>
    %c0_2 = arith.constant 0 : index
    %c0_3 = arith.constant 0 : index
    %4 = vector.load %arg2[%c0_2, %c0_3] : memref<128x128xbf16, #tpu.memory_space<vmem>>, vector<128x128xbf16>
    %c0_4 = arith.constant 0 : index
    %c0_5 = arith.constant 0 : index
    %5 = vector.load %arg3[%c0_4, %c0_5] : memref<128x128xbf16, #tpu.memory_space<vmem>>, vector<128x128xbf16>
    %cst = arith.constant dense<0.000000e+00> : vector<128x128xf32>
    %6 = tpu.matmul %4, %5, %cst {dimension_numbers = #tpu.dot_dimension_numbers<[1], [0], [0], [1], [0, 0, 1, 1], [], []>} : vector<128x128xbf16>, vector<128x128xbf16>, vector<128x128xf32> -> vector<128x128xf32>
    %7 = arith.addf %3, %6 : vector<128x128xf32>
    %c0_6 = arith.constant 0 : index
    %c0_7 = arith.constant 0 : index
    %8 = vector.load %arg8[%c0_6, %c0_7] : memref<128x128xf32, #tpu.memory_space<vmem>>, vector<128x128xf32>
    tpu.vector_store %arg8[%c0_6, %c0_7], %7 {strides = array<i32>} : memref<128x128xf32, #tpu.memory_space<vmem>>, vector<128x128xf32>,
    %c0_i32_8 = arith.constant 0 : i32
    %9 = arith.cmpi eq, %arg1, %c0_i32_8 : i32
    %10 = arith.extui %9 : i1 to i32
    %c0_i32_9 = arith.constant 0 : i32
    %11 = arith.cmpi ne, %10, %c0_i32_9 : i32
    scf.if %11 {
      %c0_10 = arith.constant 0 : index
      %c0_11 = arith.constant 0 : index
      %12 = vector.load %arg8[%c0_10, %c0_11] : memref<128x128xf32, #tpu.memory_space<vmem>>, vector<128x128xf32>
      %13 = arith.truncf %12 : vector<128x128xf32> to vector<128x128xbf16>
      %c0_12 = arith.constant 0 : index
      %c0_13 = arith.constant 0 : index
      %14 = vector.load %arg5[%c0_12, %c0_13] : memref<128x128xbf16, #tpu.memory_space<vmem>>, vector<128x128xbf16>
      %cst_14 = arith.constant dense<0.000000e+00> : vector<128x128xf32>
      %15 = tpu.matmul %13, %14, %cst_14 {dimension_numbers = #tpu.dot_dimension_numbers<[1], [0], [0], [1], [0, 0, 1, 1], [], []>} : vector<128x128xbf16>, vector<128x128xbf16>, vector<128x128xf32> -> vector<128x128xf32>
      %c0_15 = arith.constant 0 : index
      %c0_16 = arith.constant 0 : index
      %16 = vector.load %arg4[%c0_15, %c0_16] : memref<128x128xbf16, #tpu.memory_space<vmem>>, vector<128x128xbf16>
      %c0_17 = arith.constant 0 : index
      %c0_18 = arith.constant 0 : index
      %17 = vector.load %arg6[%c0_17, %c0_18] : memref<128x128xbf16, #tpu.memory_space<vmem>>, vector<128x128xbf16>
      %cst_19 = arith.constant dense<0.000000e+00> : vector<128x128xf32>
      %18 = tpu.matmul %16, %17, %cst_19 {dimension_numbers = #tpu.dot_dimension_numbers<[1], [0], [0], [1], [0, 0, 1, 1], [], []>} : vector<128x128xbf16>, vector<128x128xbf16>, vector<128x128xf32> -> vector<128x128xf32>
      %19 = arith.addf %15, %18 : vector<128x128xf32>
      %cst_20 = arith.constant 0.000000e+00 : f32
      %20 = vector.broadcast %cst_20 : f32 to vector<128x128xf32>
      %21 = arith.maximumf %19, %20 : vector<128x128xf32>
      %c0_21 = arith.constant 0 : index
      %c0_22 = arith.constant 0 : index
      %22 = vector.load %arg7[%c0_21, %c0_22] : memref<128x128xf32, #tpu.memory_space<vmem>>, vector<128x128xf32>
      tpu.vector_store %arg7[%c0_21, %c0_22], %21 {strides = array<i32>} : memref<128x128xf32, #tpu.memory_space<vmem>>, vector<128x128xf32>,
    } else {
    }
    return
  }
  func.func @transform_0(%arg0: i32, %arg1: i32) -> (i32, i32) {
    %c0_i32 = arith.constant 0 : i32
    return %arg0, %arg1 : i32, i32
  }
  func.func @transform_1(%arg0: i32, %arg1: i32) -> (i32, i32) {
    %c0_i32 = arith.constant 0 : i32
    %c0_i32_0 = arith.constant 0 : i32
    return %arg1, %c0_i32 : i32, i32
  }
  func.func @transform_2(%arg0: i32, %arg1: i32) -> (i32, i32) {
    %c0_i32 = arith.constant 0 : i32
    %c0_i32_0 = arith.constant 0 : i32
    return %arg0, %c0_i32 : i32, i32
  }
  func.func @transform_3(%arg0: i32, %arg1: i32) -> (i32, i32) {
    %c0_i32 = arith.constant 0 : i32
    %c0_i32_0 = arith.constant 0 : i32
    %c0_i32_1 = arith.constant 0 : i32
    return %c0_i32, %c0_i32_0 : i32, i32
  }
  func.func @transform_4(%arg0: i32, %arg1: i32) -> (i32, i32) {
    %c0_i32 = arith.constant 0 : i32
    %c0_i32_0 = arith.constant 0 : i32
    %c0_i32_1 = arith.constant 0 : i32
    return %c0_i32, %c0_i32_0 : i32, i32
  }
  func.func @transform_5(%arg0: i32, %arg1: i32) -> (i32, i32) {
    %c0_i32 = arith.constant 0 : i32
    %c0_i32_0 = arith.constant 0 : i32
    return %arg0, %c0_i32 : i32, i32
  }
}

</mosaic_0001>

<bundles_post_ra>
// kernel: tpu_custom_call.1
= control target key start
LH: loop header
LB: loop body
LE: loop exit
PB: predicated region body
PF: predicated region fallthrough
CT: control target
= control target key end

     0   :  { %10 = vsyncpa [#allocation4], 0  ;;  %s1394_s0 = inlined_call_operand.hbm [shape: bf16[128,128], index: 0, kind: input, shape index: {}]   ;;  %s1395_s1 = inlined_call_operand.hbm [shape: bf16[128,128], index: 1, kind: input, shape index: {}]   ;;  %s1396_s2 = inlined_call_operand.hbm [shape: bf16[128,128], index: 2, kind: input, shape index: {}]   ;;  %s1397_s3 = inlined_call_operand.hbm [shape: bf16[128,128], index: 3, kind: input, shape index: {}]   ;;  %s1398_s4 = inlined_call_operand.hbm [shape: bf16[128,128], index: 4, kind: input, shape index: {}]   ;;  %s1399_s5 = inlined_call_operand.hbm [shape: f32[128,128], index: 5, kind: output, shape index: {}]  }
   0x1   :  { %11 = vsyncpa [#allocation7], 0 }
   0x2   :  { %12 = vsyncpa [#allocation10], 0 }
   0x3   :  { %13 = vsyncpa [#allocation5], 0  ;;  %s1253_s18 = smov [#allocation6]   ;;  %s1254_s20 = smov [#allocation9]  }
   0x4   :  { %s31_s19 = sshll.u32 %s1253_s18, 4  ;;  %s55_s21 = sshll.u32 %s1254_s20, 4  ;;  %s32_s19 = int_to_ptr.vmem [resolvable:$true] %s31_s19  ;;  %s1293_s21 = int_to_ptr.vmem [resolvable:$true] %s55_s21 }
   0x5   :  { %s1113_s24 = scalar_lea.hbm %s1395_s1, 1024 }
   0x6   :  { %p1114_p0 = scmp.ne.s32.totalorder %s1395_s1, %s1113_s24  ;;  %p1117_p1 = scmp.lt.u32.totalorder %s1113_s24, %s1395_s1 }
   0x8   :  { %p1119_p2 = pnand %p1117_p1, %p1114_p0 }
   0xa   :  { %1122 = shalt.err (!%p1119_p2)
}
   0xb   :  { %s1123_s29 = scalar_lea.vmem %s32_s19, 1024  ;;  %p1128_p4 = scmp.lt.s32.totalorder %s32_s19, %s32_s19 }
   0xc   :  { %p1124_p3 = scmp.ne.s32.totalorder %s32_s19, %s1123_s29  ;;  %p1129_p5 = scmp.lt.s32.totalorder %s1123_s29, %s1123_s29 }
   0xe   :  { %p1130_p6 = por %p1129_p5, %p1128_p4 }
  0x10   :  { %p1131_p7 = pnand %p1130_p6, %p1124_p3 }
  0x12   :  { %1134 = shalt.err (!%p1131_p7)
}
  0x13   :  { %s1255_s30 = smov 64   ;;  %s1256_s6 = smov 4  }
  0x14   :  { %37 = dma.hbm_to_vmem [thread:$0]  %s1395_s1, 1024, %s32_s19, [#allocation7], %s1255_s30, %s1255_s30, %s1256_s6  }
  0x15   :  { %s1135_s11 = scalar_lea.hbm %s1397_s3, 1024 }
  0x16   :  { %p1136_p8 = scmp.ne.s32.totalorder %s1397_s3, %s1135_s11  ;;  %p1139_p9 = scmp.lt.u32.totalorder %s1135_s11, %s1397_s3 }
  0x18   :  { %p1141_p10 = pnand %p1139_p9, %p1136_p8 }
  0x1a   :  { %1144 = shalt.err (!%p1141_p10)
}
  0x1b   :  { %s1145_s16 = scalar_lea.vmem %s1293_s21, 1024  ;;  %p1150_p12 = scmp.lt.s32.totalorder %s1293_s21, %s1293_s21 }
  0x1c   :  { %p1146_p11 = scmp.ne.s32.totalorder %s1293_s21, %s1145_s16  ;;  %p1151_p13 = scmp.lt.s32.totalorder %s1145_s16, %s1145_s16 }
  0x1e   :  { %p1152_p0 = por %p1151_p13, %p1150_p12 }
  0x20   :  { %p1153_p1 = pnand %p1152_p0, %p1146_p11 }
  0x22   :  { %1156 = shalt.err (!%p1153_p1)
}
  0x23   :  { %61 = dma.hbm_to_vmem [thread:$0]  %s1397_s3, 1024, %s1293_s21, [#allocation10], %s1255_s30, %s1255_s30, %s1256_s6  }
  0x24   :  { %s1257_s18 = smov [#allocation3]   ;;  %s1258_s20 = smov [#allocation8]  }
  0x25   :  { %s19_s19 = sshll.u32 %s1257_s18, 4  ;;  %s43_s22 = sshll.u32 %s1258_s20, 4  ;;  %s20_s19 = int_to_ptr.vmem [resolvable:$true] %s19_s19  ;;  %s1330_s22 = int_to_ptr.vmem [resolvable:$true] %s43_s22 }
  0x26   :  { %s1157_s25 = scalar_lea.hbm %s1394_s0, 1024 }
  0x27   :  { %p1158_p2 = scmp.ne.s32.totalorder %s1394_s0, %s1157_s25  ;;  %p1161_p3 = scmp.lt.u32.totalorder %s1157_s25, %s1394_s0 }
  0x29   :  { %p1163_p4 = pnand %p1161_p3, %p1158_p2 }
  0x2b   :  { %1166 = shalt.err (!%p1163_p4)
}
  0x2c   :  { %s1167_s3 = scalar_lea.vmem %s20_s19, 1024  ;;  %p1172_p6 = scmp.lt.s32.totalorder %s20_s19, %s20_s19 }
  0x2d   :  { %p1168_p5 = scmp.ne.s32.totalorder %s20_s19, %s1167_s3  ;;  %p1173_p7 = scmp.lt.s32.totalorder %s1167_s3, %s1167_s3 }
  0x2f   :  { %p1174_p8 = por %p1173_p7, %p1172_p6 }
  0x31   :  { %p1175_p9 = pnand %p1174_p8, %p1168_p5 }
  0x33   :  { %1178 = shalt.err (!%p1175_p9)
}
  0x34   :  { %25 = dma.hbm_to_vmem [thread:$0]  %s1394_s0, 1024, %s20_s19, [#allocation4], %s1255_s30, %s1255_s30, %s1256_s6  }
  0x35   :  { %s1179_s10 = scalar_lea.hbm %s1396_s2, 1024 }
  0x36   :  { %p1180_p10 = scmp.ne.s32.totalorder %s1396_s2, %s1179_s10  ;;  %p1183_p11 = scmp.lt.u32.totalorder %s1179_s10, %s1396_s2 }
  0x38   :  { %p1185_p12 = pnand %p1183_p11, %p1180_p10 }
  0x3a   :  { %1188 = shalt.err (!%p1185_p12)
}
  0x3b   :  { %s1189_s15 = scalar_lea.vmem %s1330_s22, 1024  ;;  %p1194_p0 = scmp.lt.s32.totalorder %s1330_s22, %s1330_s22 }
  0x3c   :  { %p1190_p13 = scmp.ne.s32.totalorder %s1330_s22, %s1189_s15  ;;  %p1195_p1 = scmp.lt.s32.totalorder %s1189_s15, %s1189_s15 }
  0x3e   :  { %p1196_p2 = por %p1195_p1, %p1194_p0 }
  0x40   :  { %p1197_p3 = pnand %p1196_p2, %p1190_p13 }
  0x42   :  { %1200 = shalt.err (!%p1197_p3)
}
  0x43   :  { %49 = dma.hbm_to_vmem [thread:$0]  %s1396_s2, 1024, %s1330_s22, [#allocation7], %s1255_s30, %s1255_s30, %s1256_s6  }
  0x44   :  { %s1259_s1 = smov [#allocation11]   ;;  %s1201_s20 = scalar_lea.hbm %s1398_s4, 1024 }
  0x45   :  { %s67_s17 = sshll.u32 %s1259_s1, 4  ;;  %p1202_p4 = scmp.ne.s32.totalorder %s1398_s4, %s1201_s20  ;;  %s68_s17 = int_to_ptr.vmem [resolvable:$true] %s67_s17 }
  0x46   :  { %p1205_p5 = scmp.lt.u32.totalorder %s1201_s20, %s1398_s4 }
  0x48   :  { %p1207_p6 = pnand %p1205_p5, %p1202_p4 }
  0x4a   :  { %1210 = shalt.err (!%p1207_p6)
}
  0x4b   :  { %s1211_s27 = scalar_lea.vmem %s68_s17, 1024  ;;  %p1216_p8 = scmp.lt.s32.totalorder %s68_s17, %s68_s17 }
  0x4c   :  { %p1212_p7 = scmp.ne.s32.totalorder %s68_s17, %s1211_s27  ;;  %p1217_p9 = scmp.lt.s32.totalorder %s1211_s27, %s1211_s27 }
  0x4e   :  { %p1218_p10 = por %p1217_p9, %p1216_p8 }
  0x50   :  { %p1219_p11 = pnand %p1218_p10, %p1212_p7 }
  0x52   :  { %1222 = shalt.err (!%p1219_p11)
}
  0x53   :  { %73 = dma.hbm_to_vmem [thread:$0]  %s1398_s4, 1024, %s68_s17, [#allocation10], %s1255_s30, %s1255_s30, %s1256_s6  }
  0x54   :  { %1245 = dma.done.wait [#allocation4], 1024  }
  0x55   :  { %1246 = vsyncadd [#allocation4], 4294966272 }
  0x56   :  { %1247 = dma.done.wait [#allocation7], 2048  }
  0x57   :  { %1248 = vsyncadd [#allocation7], 4294965248 }
  0x58   :  { %1249 = dma.done.wait [#allocation10], 2048  }
  0x59   :  { %1250 = vsyncadd [#allocation10], 4294965248  ;;  %v1073_v0 = vld [vmem:[#allocation6] sm:$0xff]   ;;  %v1074_v1 = vld [vmem:[#allocation6 + $0x8] sm:$0xff]   ;;  %s1260_s4 = smov [#allocation12]  }
  0x5a   :  { %935 = vmatprep.subr.bf16.mxu0 %v1073_v0  ;;  %v1075_v2 = vld [vmem:[#allocation6 + $0x10] sm:$0xff]   ;;  %v1076_v3 = vld [vmem:[#allocation6 + $0x18] sm:$0xff]   ;;  %v1081_v4 = vld [vmem:[#allocation3] sm:$0xff]   ;;  %s833_s30 = sshll.u32 %s1260_s4, 4  ;;  %s834_s30 = int_to_ptr.vmem [resolvable:$true] %s833_s30 }
  0x5b   :  { %936 = vmatpush3.bf16.msra.mxu0 %v1073_v0  ;;  %951 = vmatprep.mubr.bf16.mxu0 %v1081_v4  ;;  %v1077_v5 = vld [vmem:[#allocation6 + $0x20] sm:$0xff]   ;;  %v1078_v6 = vld [vmem:[#allocation6 + $0x28] sm:$0xff]   ;;  %v1079_v9 = vld [vmem:[#allocation6 + $0x30] sm:$0xff]   ;;  %s1223_s6 = scalar_lea.vmem %s834_s30, 2048  ;;  %p1228_p13 = scmp.lt.s32.totalorder %s834_s30, %s834_s30 }
  0x5c   :  { %937 = vmatprep.subr.bf16.mxu0 %v1074_v1  ;;  %v1089_v7 = vld [vmem:[#allocation11] sm:$0xff]   ;;  %v1090_v8 = vld [vmem:[#allocation11 + $0x8] sm:$0xff]   ;;  %v1091_v10 = vld [vmem:[#allocation11 + $0x10] sm:$0xff]   ;;  %p1224_p12 = scmp.ne.s32.totalorder %s834_s30, %s1223_s6  ;;  %p1229_p0 = scmp.lt.s32.totalorder %s1223_s6, %s1223_s6 }
  0x5d   :  { %967 = vmatprep.subr.bf16.mxu1 %v1089_v7  ;;  %v1080_v11 = vld [vmem:[#allocation6 + $0x38] sm:$0xff]   ;;  %v1093_v13 = vld [vmem:[#allocation11 + $0x20] sm:$0xff]   ;;  %v1082_v16 = vld [vmem:[#allocation3 + $0x8] sm:$0xff]  }
  0x5e   :  { %968 = vmatpush3.bf16.msra.mxu1 %v1089_v7  ;;  %v1092_v12 = vld [vmem:[#allocation11 + $0x18] sm:$0xff]   ;;  %v1100_v14 = vld [vmem:[#allocation8] sm:$0xff]   ;;  %v1083_v17 = vld [vmem:[#allocation3 + $0x10] sm:$0xff]   ;;  %p1230_p1 = por %p1229_p0, %p1228_p13 }
  0x5f   :  { %938 = vmatpush3.bf16.msra.mxu0 %v1074_v1  ;;  %969 = vmatprep.subr.bf16.mxu1 %v1090_v8  ;;  %v1094_v15 = vld [vmem:[#allocation9] sm:$0xff]   ;;  %v1095_v18 = vld [vmem:[#allocation11 + $0x28] sm:$0xff]   ;;  %v1097_v20 = vld [vmem:[#allocation11 + $0x30] sm:$0xff]  }
  0x60   :  { %939 = vmatprep.subr.bf16.mxu0 %v1075_v2  ;;  %983 = vmatprep.mubr.bf16.mxu1 %v1100_v14  ;;  %v1096_v19 = vld [vmem:[#allocation9 + $0x8] sm:$0xff]   ;;  %v1098_v21 = vld [vmem:[#allocation9 + $0x10] sm:$0xff]   ;;  %v1084_v22 = vld [vmem:[#allocation3 + $0x18] sm:$0xff]   ;;  %p1231_p2 = pnand %p1230_p1, %p1224_p12 }
  0x61   :  { %v1085_v23 = vld [vmem:[#allocation3 + $0x20] sm:$0xff]   ;;  %v1099_v24 = vld [vmem:[#allocation11 + $0x38] sm:$0xff]   ;;  %v1086_v27 = vld [vmem:[#allocation3 + $0x28] sm:$0xff]  }
  0x62   :  { %970 = vmatpush3.bf16.msra.mxu1 %v1090_v8  ;;  %v1101_v25 = vld [vmem:[#allocation9 + $0x18] sm:$0xff]   ;;  %v1103_v26 = vld [vmem:[#allocation9 + $0x20] sm:$0xff]   ;;  %v1102_v28 = vld [vmem:[#allocation8 + $0x8] sm:$0xff]  }
  0x63   :  { %940 = vmatpush3.bf16.msra.mxu0 %v1075_v2  ;;  %971 = vmatprep.subr.bf16.mxu1 %v1091_v10  ;;  %v1087_v29 = vld [vmem:[#allocation3 + $0x30] sm:$0xff]   ;;  %v1105_v31 = vld [vmem:[#allocation9 + $0x28] sm:$0xff]   ;;  %v1088_v33 = vld [vmem:[#allocation3 + $0x38] sm:$0xff]  }
  0x64   :  { %941 = vmatprep.subr.bf16.mxu0 %v1076_v3  ;;  %v1104_v30 = vld [vmem:[#allocation8 + $0x10] sm:$0xff]   ;;  %v1106_v34 = vld [vmem:[#allocation8 + $0x18] sm:$0xff]   ;;  %v1109_v36 = vld [vmem:[#allocation8 + $0x20] sm:$0xff]  }
  0x65   :  { %v1107_v32 = vld [vmem:[#allocation9 + $0x30] sm:$0xff]   ;;  %v1108_v35 = vld [vmem:[#allocation9 + $0x38] sm:$0xff]   ;;  %v1110_v37 = vld [vmem:[#allocation8 + $0x28] sm:$0xff]  }
  0x66   :  { %972 = vmatpush3.bf16.msra.mxu1 %v1091_v10  ;;  %v1111_v38 = vld [vmem:[#allocation8 + $0x30] sm:$0xff]   ;;  %v1112_v39 = vld [vmem:[#allocation8 + $0x38] sm:$0xff]  }
  0x67   :  { %942 = vmatpush3.bf16.msra.mxu0 %v1076_v3  ;;  %973 = vmatprep.subr.bf16.mxu1 %v1092_v12 }
  0x68   :  { %943 = vmatprep.subr.bf16.mxu0 %v1077_v5 }
  0x6a   :  { %974 = vmatpush3.bf16.msra.mxu1 %v1092_v12 }
  0x6b   :  { %944 = vmatpush3.bf16.msra.mxu0 %v1077_v5  ;;  %975 = vmatprep.subr.bf16.mxu1 %v1093_v13 }
  0x6c   :  { %945 = vmatprep.subr.bf16.mxu0 %v1078_v6 }
  0x6e   :  { %976 = vmatpush3.bf16.msra.mxu1 %v1093_v13 }
  0x6f   :  { %946 = vmatpush3.bf16.msra.mxu0 %v1078_v6  ;;  %977 = vmatprep.subr.bf16.mxu1 %v1095_v18 }
  0x70   :  { %947 = vmatprep.subr.bf16.mxu0 %v1079_v9 }
  0x72   :  { %978 = vmatpush3.bf16.msra.mxu1 %v1095_v18 }
  0x73   :  { %948 = vmatpush3.bf16.msra.mxu0 %v1079_v9  ;;  %979 = vmatprep.subr.bf16.mxu1 %v1097_v20 }
  0x74   :  { %949 = vmatprep.subr.bf16.mxu0 %v1080_v11 }
  0x76   :  { %980 = vmatpush3.bf16.msra.mxu1 %v1097_v20 }
  0x77   :  { %950 = vmatpush3.bf16.msra.mxu0 %v1080_v11  ;;  %981 = vmatprep.subr.bf16.mxu1 %v1099_v24 }
  0x78   :  { %999 = vmatprep.subr.bf16.mxu0 %v1094_v15 }
  0x7a   :  { %952 = vmatmul.mubr.bf16.vlgmr.msra.gmra.mrb[0].mxu0 %v1082_v16  ;;  %982 = vmatpush3.bf16.msra.mxu1 %v1099_v24 }
  0x7b   :  { %955 = vmatprep.mubr.bf16.mxu0 %v1083_v17  ;;  %1000 = vmatpush3.bf16.msra.mxu0 %v1094_v15 }
  0x7c   :  { %1001 = vmatprep.subr.bf16.mxu0 %v1096_v19  ;;  %1031 = vmatprep.subr.bf16.mxu1 %v1094_v15 }
  0x7d   :  { %984 = vmatmul.mubr.bf16.vlgmr.msra.gmra.mrb[0].mxu1 %v1102_v28 }
  0x7e   :  { %1039 = vmatpush3.bf16.msra.mxu1 %v1094_v15  ;;  %987 = vmatprep.mubr.bf16.mxu1 %v1104_v30 }
  0x7f   :  { %1002 = vmatpush3.bf16.msra.mxu0 %v1096_v19  ;;  %1032 = vmatprep.subr.bf16.mxu1 %v1096_v19 }
  0x80   :  { %1003 = vmatprep.subr.bf16.mxu0 %v1098_v21 }
  0x82   :  { %956 = vmatmul.mubr.bf16.gmra.mrb[4].mxu0 %v1084_v22  ;;  %1040 = vmatpush3.bf16.msra.mxu1 %v1096_v19 }
  0x83   :  { %959 = vmatprep.mubr.bf16.mxu0 %v1085_v23  ;;  %1004 = vmatpush3.bf16.msra.mxu0 %v1098_v21 }
  0x84   :  { %1005 = vmatprep.subr.bf16.mxu0 %v1101_v25  ;;  %1033 = vmatprep.subr.bf16.mxu1 %v1098_v21 }
  0x85   :  { %988 = vmatmul.mubr.bf16.gmra.mrb[4].mxu1 %v1106_v34 }
  0x86   :  { %1041 = vmatpush3.bf16.msra.mxu1 %v1098_v21  ;;  %991 = vmatprep.mubr.bf16.mxu1 %v1109_v36 }
  0x87   :  { %1006 = vmatpush3.bf16.msra.mxu0 %v1101_v25  ;;  %1034 = vmatprep.subr.bf16.mxu1 %v1101_v25 }
  0x88   :  { %1007 = vmatprep.subr.bf16.mxu0 %v1103_v26 }
  0x8a   :  { %960 = vmatmul.mubr.bf16.gmra.mrb[8].mxu0 %v1086_v27  ;;  %1042 = vmatpush3.bf16.msra.mxu1 %v1101_v25 }
  0x8b   :  { %963 = vmatprep.mubr.bf16.mxu0 %v1087_v29  ;;  %1008 = vmatpush3.bf16.msra.mxu0 %v1103_v26 }
  0x8c   :  { %1009 = vmatprep.subr.bf16.mxu0 %v1105_v31  ;;  %1035 = vmatprep.subr.bf16.mxu1 %v1103_v26 }
  0x8d   :  { %992 = vmatmul.mubr.bf16.gmra.mrb[8].mxu1 %v1110_v37 }
  0x8e   :  { %1043 = vmatpush3.bf16.msra.mxu1 %v1103_v26  ;;  %995 = vmatprep.mubr.bf16.mxu1 %v1111_v38 }
  0x8f   :  { %1010 = vmatpush3.bf16.msra.mxu0 %v1105_v31  ;;  %1036 = vmatprep.subr.bf16.mxu1 %v1105_v31 }
  0x90   :  { %1011 = vmatprep.subr.bf16.mxu0 %v1107_v32 }
  0x92   :  { %964 = vmatmul.mubr.bf16.gmra.mrb[12].mxu0 %v1088_v33  ;;  %1044 = vmatpush3.bf16.msra.mxu1 %v1105_v31 }
  0x93   :  { %1012 = vmatpush3.bf16.msra.mxu0 %v1107_v32  ;;  %1037 = vmatprep.subr.bf16.mxu1 %v1107_v32 }
  0x94   :  { %1013 = vmatprep.subr.bf16.mxu0 %v1108_v35 }
  0x95   :  { %996 = vmatmul.mubr.bf16.gmra.mrb[12].mxu1 %v1112_v39 }
  0x96   :  { %1045 = vmatpush3.bf16.msra.mxu1 %v1107_v32 }
  0x97   :  { %1038 = vmatprep.subr.bf16.mxu1 %v1108_v35  ;;  %1014 = vmatpush3.bf16.msra.mxu0 %v1108_v35 }
  0x9a   :  { %1046 = vmatpush3.bf16.msra.mxu1 %v1108_v35 }
 0x14d   :  { %v953_v40 = vpop.f32.mrb[0].mxu0 }
 0x14e   :  { %v288_v41 = vpop.f32.mrb[1].mxu0 }
 0x14f   :  { %v954_v42 = vpop.f32.mrb[2].mxu0 }
 0x150   :  { %v403_v43 = vpack.c.bf16 %v954_v42, %v953_v40  ;;  %v291_v44 = vpop.f32.mrb[3].mxu0  ;;  %v985_v53 = vpop.f32.mrb[0].mxu1 }
 0x151   :  { %v402_v45 = vpack.c.bf16 %v291_v44, %v288_v41  ;;  %v588_v55 = vpop.f32.mrb[1].mxu1 }
 0x152   :  { %v986_v57 = vpop.f32.mrb[2].mxu1 }
 0x153   :  { %1015 = vmatprep.mubr.bf16.mxu0 %v402_v45  ;;  %v591_v60 = vpop.f32.mrb[3].mxu1 }
 0x154   :  { %1016 = vmatmul.mubr.bf16.vlgmr.msra.gmra.mrb[16].mxu0 %v403_v43 }
 0x155   :  { %v957_v46 = vpop.f32.mrb[4].mxu0 }
 0x156   :  { %v304_v47 = vpop.f32.mrb[5].mxu0 }
 0x157   :  { %v958_v48 = vpop.f32.mrb[6].mxu0 }
 0x158   :  { %v405_v49 = vpack.c.bf16 %v958_v48, %v957_v46  ;;  %v307_v50 = vpop.f32.mrb[7].mxu0  ;;  %v989_v63 = vpop.f32.mrb[4].mxu1 }
 0x159   :  { %v404_v51 = vpack.c.bf16 %v307_v50, %v304_v47  ;;  %v604_v1 = vpop.f32.mrb[5].mxu1 }
 0x15a   :  { %v990_v3 = vpop.f32.mrb[6].mxu1 }
 0x15b   :  { %1019 = vmatprep.mubr.bf16.mxu0 %v404_v51  ;;  %v607_v6 = vpop.f32.mrb[7].mxu1 }
 0x15c   :  { %1020 = vmatmul.mubr.bf16.gmra.mrb[20].mxu0 %v405_v49 }
 0x15d   :  { %v961_v52 = vpop.f32.mrb[8].mxu0 }
 0x15e   :  { %v320_v54 = vpop.f32.mrb[9].mxu0 }
 0x15f   :  { %v962_v56 = vpop.f32.mrb[10].mxu0 }
 0x160   :  { %v407_v58 = vpack.c.bf16 %v962_v56, %v961_v52  ;;  %v323_v59 = vpop.f32.mrb[11].mxu0 }
 0x161   :  { %v406_v61 = vpack.c.bf16 %v323_v59, %v320_v54 }
 0x163   :  { %1023 = vmatprep.mubr.bf16.mxu1 %v406_v61 }
 0x164   :  { %1024 = vmatmul.mubr.bf16.vlgmr.msra.gmra.mrb[8].mxu1 %v407_v58 }
 0x165   :  { %v965_v62 = vpop.f32.mrb[12].mxu0 }
 0x166   :  { %v336_v0 = vpop.f32.mrb[13].mxu0 }
 0x167   :  { %v966_v2 = vpop.f32.mrb[14].mxu0 }
 0x168   :  { %v409_v4 = vpack.c.bf16 %v966_v2, %v965_v62  ;;  %v339_v5 = vpop.f32.mrb[15].mxu0 }
 0x169   :  { %v408_v7 = vpack.c.bf16 %v339_v5, %v336_v0 }
 0x16b   :  { %1027 = vmatprep.mubr.bf16.mxu1 %v408_v7 }
 0x16c   :  { %1028 = vmatmul.mubr.bf16.gmra.mrb[12].mxu1 %v409_v4 }
 0x227   :  { %v1017_v8 = vpop.f32.mrb[16].mxu0 }
 0x228   :  { %v742_v9 = vadd.f32 %v1017_v8, %v985_v53  ;;  %v733_v10 = vpop.f32.mrb[17].mxu0 }
 0x229   :  { %v734_v11 = vadd.f32 %v733_v10, %v588_v55  ;;  %v1018_v12 = vpop.f32.mrb[18].mxu0 }
 0x22a   :  { %v798_v13 = vmax.f32 %v742_v9, 0.0  ;;  %v745_v14 = vadd.f32 %v1018_v12, %v986_v57  ;;  %v736_v15 = vpop.f32.mrb[19].mxu0 }
 0x22b   :  { %v796_v16 = vmax.f32 %v734_v11, 0.0  ;;  %v737_v17 = vadd.f32 %v736_v15, %v591_v60 }
 0x22c   :  { %814 = vst [vmem:[#allocation12 + $0x10] sm:$0xff] %v798_v13  ;;  %v799_v18 = vmax.f32 %v745_v14, 0.0 }
 0x22d   :  { %812 = vst [vmem:[#allocation12] sm:$0xff] %v796_v16  ;;  %v797_v19 = vmax.f32 %v737_v17, 0.0 }
 0x22e   :  { %815 = vst [vmem:[#allocation12 + $0x18] sm:$0xff] %v799_v18 }
 0x22f   :  { %813 = vst [vmem:[#allocation12 + $0x8] sm:$0xff] %v797_v19  ;;  %v1021_v20 = vpop.f32.mrb[20].mxu0 }
 0x230   :  { %v758_v21 = vadd.f32 %v1021_v20, %v989_v63  ;;  %v749_v22 = vpop.f32.mrb[21].mxu0 }
 0x231   :  { %v750_v23 = vadd.f32 %v749_v22, %v604_v1  ;;  %v1022_v24 = vpop.f32.mrb[22].mxu0 }
 0x232   :  { %v802_v25 = vmax.f32 %v758_v21, 0.0  ;;  %v761_v26 = vadd.f32 %v1022_v24, %v990_v3  ;;  %v752_v27 = vpop.f32.mrb[23].mxu0 }
 0x233   :  { %v800_v28 = vmax.f32 %v750_v23, 0.0  ;;  %v753_v29 = vadd.f32 %v752_v27, %v607_v6 }
 0x234   :  { %818 = vst [vmem:[#allocation12 + $0x30] sm:$0xff] %v802_v25  ;;  %v803_v30 = vmax.f32 %v761_v26, 0.0 }
 0x235   :  { %816 = vst [vmem:[#allocation12 + $0x20] sm:$0xff] %v800_v28  ;;  %v801_v31 = vmax.f32 %v753_v29, 0.0 }
 0x236   :  { %819 = vst [vmem:[#allocation12 + $0x38] sm:$0xff] %v803_v30 }
 0x237   :  { %817 = vst [vmem:[#allocation12 + $0x28] sm:$0xff] %v801_v31  ;;  %v1025_v32 = vpop.f32.mrb[8].mxu1 }
 0x238   :  { %v806_v33 = vmax.f32 %v1025_v32, 0.0  ;;  %v765_v34 = vpop.f32.mrb[9].mxu1 }
 0x239   :  { %v804_v35 = vmax.f32 %v765_v34, 0.0  ;;  %v1026_v36 = vpop.f32.mrb[10].mxu1 }
 0x23a   :  { %822 = vst [vmem:[#allocation12 + $0x50] sm:$0xff] %v806_v33  ;;  %v807_v37 = vmax.f32 %v1026_v36, 0.0  ;;  %v768_v38 = vpop.f32.mrb[11].mxu1 }
 0x23b   :  { %820 = vst [vmem:[#allocation12 + $0x40] sm:$0xff] %v804_v35  ;;  %v805_v39 = vmax.f32 %v768_v38, 0.0 }
 0x23c   :  { %823 = vst [vmem:[#allocation12 + $0x58] sm:$0xff] %v807_v37 }
 0x23d   :  { %821 = vst [vmem:[#allocation12 + $0x48] sm:$0xff] %v805_v39 }
 0x23f   :  { %v1029_v40 = vpop.f32.mrb[12].mxu1 }
 0x240   :  { %v810_v41 = vmax.f32 %v1029_v40, 0.0  ;;  %v781_v42 = vpop.f32.mrb[13].mxu1 }
 0x241   :  { %v808_v43 = vmax.f32 %v781_v42, 0.0  ;;  %v1030_v44 = vpop.f32.mrb[14].mxu1 }
 0x242   :  { %826 = vst [vmem:[#allocation12 + $0x70] sm:$0xff] %v810_v41  ;;  %v811_v45 = vmax.f32 %v1030_v44, 0.0  ;;  %v784_v46 = vpop.f32.mrb[15].mxu1 }
 0x243   :  { %824 = vst [vmem:[#allocation12 + $0x60] sm:$0xff] %v808_v43  ;;  %v809_v47 = vmax.f32 %v784_v46, 0.0 }
 0x244   :  { %827 = vst [vmem:[#allocation12 + $0x78] sm:$0xff] %v811_v45 }
 0x245   :  { %825 = vst [vmem:[#allocation12 + $0x68] sm:$0xff] %v809_v47 }
 0x246   :  { %1234 = shalt.err (!%p1231_p2)
}
 0x247   :  { %s1235_s3 = scalar_lea.hbm %s1399_s5, 2048 }
 0x248   :  { %p1236_p3 = scmp.ne.s32.totalorder %s1399_s5, %s1235_s3  ;;  %p1239_p4 = scmp.lt.u32.totalorder %s1235_s3, %s1399_s5 }
 0x24a   :  { %p1241_p5 = pnand %p1239_p4, %p1236_p3 }
 0x24c   :  { %1244 = shalt.err (!%p1241_p5)
}
 0x24d   :  { %s1261_s10 = smov 128   ;;  %s1262_s11 = smov 8  }
 0x24e   :  { %839 = dma.vmem_to_hbm [thread:$0]  %s834_s30, 2048, %s1399_s5, [#allocation5], %s1261_s10, %s1261_s10, %s1262_s11  }
 0x24f   :  { %1251 = dma.done.wait [#allocation5], 2048  }
 0x250   :  { %1252 = vsyncadd [#allocation5], 4294965248 }
 0x251   :  { %843 = vsyncpa [#allocation4], 1 }
 0x252   :  { %844 = vsyncpa [#allocation7], 1 }
 0x253   :  { %845 = vsyncpa [#allocation10], 1 }
 0x254   :  { %846 = vsyncpa [#allocation5], 1 }

</bundles_post_ra>
